<compile_context>
chip_gen: v7x
topology: tpu7x:2x2x1
jax: 0.10.0
libtpu: 0.0.40
codegen_flags: <defaults>
</compile_context>

<pallas_src>
import functools

import jax
import jax.numpy as jnp
from jax import lax
from jax.experimental import pallas as pl
from jax.experimental.pallas import tpu as pltpu

LEAKY = 0.2
_LANE = 128
_TILE_CAP = 16384  # per-step batch tile cap (2 MiB f32 x-tile per buffer)


def _leaky_relu(x, slope):
    # slope < 1  =>  max(x, slope*x) == LeakyReLU_slope(x)
    return jnp.maximum(x, slope * x)


def discriminator_kernel(x_ref, w1_ref, b1_ref, w2_ref, b2_ref, w3_ref, b3_ref,
                         out_ref):
    # x tile is batch-major (TB, emb), DMA'd directly from the (B, emb) array.
    x = x_ref[...].astype(w1_ref.dtype)

    # Layer 1: contract feature dims of w1 (n_units, emb) and x (TB, emb)
    # -> feature-major (n_units, TB); batch lands on the lane axis so every
    # downstream tensor (and the output row) is lane-dense.  f32 accumulate.
    h = lax.dot_general(w1_ref[...], x,
                        dimension_numbers=(((1,), (1,)), ((), ())),
                        preferred_element_type=jnp.float32)
    h = _leaky_relu(h + b1_ref[...], LEAKY)          # b1: (n_units, 1) f32

    # Layer 2: (n_units, n_units) @ (n_units, TB) -> (n_units, TB).
    h = jnp.dot(w2_ref[...], h.astype(w2_ref.dtype),
                preferred_element_type=jnp.float32)
    h = _leaky_relu(h + b2_ref[...], LEAKY)

    # Output Linear(n_units, 1) on the MXU: w3 is stored zero-padded to
    # (8, n_units) so M is sublane-aligned; row 0 carries the real weights.
    o = jnp.dot(w3_ref[...], h.astype(w3_ref.dtype),
                preferred_element_type=jnp.float32)  # (8, TB)
    out_ref[...] = (o[0:1, :] + b3_ref[...]).astype(out_ref.dtype)


def discriminator_forward(x, params, *, tile_batch=None):
    """x: (B, emb_dim). Returns (B,) f32 (matches `.view(-1)`).

    params: (w1, b1, w2, b2, w3_padded, b3) from `init_params` (weights may be
    bf16 via `cast_weights`; x is never cast or copied in the wrapper).
    """
    w1, b1, w2, b2, w3p, b3 = params
    B, emb = x.shape
    n_units = w1.shape[0]

    if tile_batch is None:
        if B <= 1024:
            # Single block equal to the full batch (always layout-legal).
            tile_batch = B
        else:
            # Lane-multiple tiles, capped, and >= 2 grid steps so both v7x
            # TensorCores get work; ragged tail handled by Pallas masking.
            tile_batch = min(_TILE_CAP, pl.cdiv(pl.cdiv(B, 2), _LANE) * _LANE)
    TB = tile_batch
    if TB != B and (TB % _LANE != 0 or TB > B):
        raise ValueError(
            f"tile_batch={TB} must equal B or be a multiple of {_LANE} and <= B={B}")

    grid = (pl.cdiv(B, TB),)

    def resident(a):
        # Full-array block, same block every grid step -> stays in VMEM.
        ndim = a.ndim
        return pl.BlockSpec(a.shape, lambda i, _n=ndim: (0,) * _n)

    def nbytes(a):
        return a.size * a.dtype.itemsize

    param_bytes = sum(nbytes(a) for a in (w1, b1, w2, b2, w3p, b3))
    cost = pl.CostEstimate(
        flops=2 * B * (emb * n_units + n_units * n_units + n_units),
        transcendentals=0,
        bytes_accessed=nbytes(x) + B * 4 + param_bytes,
    )

    out = pl.pallas_call(
        discriminator_kernel,
        out_shape=jax.ShapeDtypeStruct((1, B), jnp.float32),
        grid=grid,
        in_specs=[
            pl.BlockSpec((TB, emb), lambda i: (i, 0)),   # x: batch-major tile
            resident(w1), resident(b1),
            resident(w2), resident(b2),
            resident(w3p), resident(b3),
        ],
        out_specs=pl.BlockSpec((1, TB), lambda i: (0, i)),  # lane-dense output
        compiler_params=pltpu.CompilerParams(
            dimension_semantics=("parallel",),
            vmem_limit_bytes=32 * 1024 * 1024),
        cost_estimate=cost,
    )(x, w1, b1, w2, b2, w3p, b3)

    return out.reshape(-1)


def init_params(key, emb_dim, n_units):
    """Deterministic init mimicking nn.Linear's U(-1/sqrt(fan_in), ...).

    Weights are PyTorch-style (out_dim, in_dim); biases (out_dim, 1) f32; the
    final-layer weight is zero-padded to (8, n_units) with row 0 real so the
    in-kernel MXU matmul has a sublane-aligned M dim."""
    keys = jax.random.split(key, 6)

    def lin(kw, kb, fan_in, fan_out):
        bound = 1.0 / (fan_in ** 0.5)
        w = jax.random.uniform(kw, (fan_out, fan_in), jnp.float32, -bound, bound)
        b = jax.random.uniform(kb, (fan_out, 1), jnp.float32, -bound, bound)
        return w, b

    w1, b1 = lin(keys[0], keys[1], emb_dim, n_units)
    w2, b2 = lin(keys[2], keys[3], n_units, n_units)
    w3, b3 = lin(keys[4], keys[5], n_units, 1)
    w3p = jnp.zeros((8, n_units), jnp.float32).at[0].set(w3[0])
    b3 = b3.reshape(1, 1)
    return (w1, b1, w2, b2, w3p, b3)


def cast_weights(params, dtype):
    """Cast only the (tiny) matmul weights; biases / epilogue stay f32 and x
    is never cast (casting x would add HBM traffic on a mem-bound kernel)."""
    w1, b1, w2, b2, w3p, b3 = params
    return (w1.astype(dtype), b1, w2.astype(dtype), b2, w3p.astype(dtype), b3)


def reference_forward(x, params):
    """Plain-JAX reference (f32, highest precision) for correctness checks."""
    w1, b1, w2, b2, w3p, b3 = params
    dot = functools.partial(jnp.dot, precision=lax.Precision.HIGHEST)
    xf = x.astype(jnp.float32)
    h = _leaky_relu(dot(xf, w1.astype(jnp.float32).T) + b1.reshape(1, -1), LEAKY)
    h = _leaky_relu(dot(h, w2.astype(jnp.float32).T) + b2.reshape(1, -1), LEAKY)
    o = dot(h, w3p.astype(jnp.float32)[0:1].T) + b3
    return o.reshape(-1)


# TODO(synk): nn.Dropout / nn.BatchNorm1d are disabled in this configuration
# (drop_prob=0, drop_prob_input=0, batch_norm=False); clip_weights is a
# training-time weight mutation, not part of forward, so neither is in-kernel.

if __name__ == "__main__":
    emb_dim, n_units, batch = 32, 32, 8

    key = jax.random.PRNGKey(0)
    k_x, k_p, k_x2 = jax.random.split(key, 3)

    params = init_params(k_p, emb_dim, n_units)

    # Small case: single full-batch block, f32, tight tolerance vs reference.
    x = jax.random.normal(k_x, (batch, emb_dim), dtype=jnp.float32)
    out = jax.block_until_ready(discriminator_forward(x, params))
    ref = reference_forward(x, params)
    assert out.shape == (batch,)
    assert jnp.allclose(out, ref, atol=1e-4, rtol=1e-4)

    # Multi-step grid with a ragged final block (B=300, TB=128 -> 3 steps,
    # last block masked by Pallas; no wrapper-side padding copy).
    x2 = jax.random.normal(k_x2, (300, emb_dim), dtype=jnp.float32)
    out2 = jax.block_until_ready(
        discriminator_forward(x2, params, tile_batch=128))
    ref2 = reference_forward(x2, params)
    assert out2.shape == (300,)
    assert jnp.allclose(out2, ref2, atol=1e-4, rtol=1e-4)

    # bf16-weight path: only the ~4 KiB of weights are cast; x stays f32 in
    # HBM (no wrapper cast), the x tile is cast in-kernel under the DMA.
    bf16_params = cast_weights(params, jnp.bfloat16)
    out_bf16 = jax.block_until_ready(discriminator_forward(x, bf16_params))
    assert jnp.allclose(out_bf16, ref, atol=5e-2, rtol=5e-2)

    print("KERNEL_OK")
</pallas_src>

<mosaic_0001>
module attributes {stable_mosaic.version = 11 : i64} {
  func.func @discriminator_kernel(%arg0: i32, %arg1: memref<8x32xf32, #tpu.memory_space<vmem>>, %arg2: memref<32x32xf32, #tpu.memory_space<vmem>>, %arg3: memref<32x1xf32, #tpu.memory_space<vmem>>, %arg4: memref<32x32xf32, #tpu.memory_space<vmem>>, %arg5: memref<32x1xf32, #tpu.memory_space<vmem>>, %arg6: memref<8x32xf32, #tpu.memory_space<vmem>>, %arg7: memref<1x1xf32, #tpu.memory_space<vmem>>, %arg8: memref<1x8xf32, #tpu.memory_space<vmem>>) attributes {dimension_semantics = [#tpu.dimension_semantics<parallel>], iteration_bounds = array<i64: 1>, scalar_prefetch = 0 : i64, scratch_operands = 0 : i64, tpu.core_type = #tpu.core_type<tc>, window_params = [{transform_indices = @transform_0, window_bounds = array<i64: 8, 32>}, {pipeline_mode = #tpu.pipeline_mode<synchronous>, transform_indices = @transform_1, window_bounds = array<i64: 32, 32>}, {pipeline_mode = #tpu.pipeline_mode<synchronous>, transform_indices = @transform_2, window_bounds = array<i64: 32, 1>}, {pipeline_mode = #tpu.pipeline_mode<synchronous>, transform_indices = @transform_3, window_bounds = array<i64: 32, 32>}, {pipeline_mode = #tpu.pipeline_mode<synchronous>, transform_indices = @transform_4, window_bounds = array<i64: 32, 1>}, {pipeline_mode = #tpu.pipeline_mode<synchronous>, transform_indices = @transform_5, window_bounds = array<i64: 8, 32>}, {pipeline_mode = #tpu.pipeline_mode<synchronous>, transform_indices = @transform_6, window_bounds = array<i64: 1, 1>}, {transform_indices = @transform_7, window_bounds = array<i64: 1, 8>}]} {
    %c0 = arith.constant 0 : index
    %c0_0 = arith.constant 0 : index
    %0 = vector.load %arg1[%c0, %c0_0] : memref<8x32xf32, #tpu.memory_space<vmem>>, vector<8x32xf32>
    %c0_1 = arith.constant 0 : index
    %c0_2 = arith.constant 0 : index
    %1 = vector.load %arg2[%c0_1, %c0_2] : memref<32x32xf32, #tpu.memory_space<vmem>>, vector<32x32xf32>
    %cst = arith.constant dense<0.000000e+00> : vector<32x8xf32>
    %2 = tpu.matmul %1, %0, %cst {dimension_numbers = #tpu.dot_dimension_numbers<[1], [1], [0], [0], [0, 0, 1, 0], [], []>} : vector<32x32xf32>, vector<8x32xf32>, vector<32x8xf32> -> vector<32x8xf32>
    %c0_3 = arith.constant 0 : index
    %c0_4 = arith.constant 0 : index
    %3 = vector.load %arg3[%c0_3, %c0_4] : memref<32x1xf32, #tpu.memory_space<vmem>>, vector<32x1xf32>
    %4 = vector.broadcast %3 : vector<32x1xf32> to vector<32x8xf32>
    %5 = arith.addf %2, %4 : vector<32x8xf32>
    %cst_5 = arith.constant 2.000000e-01 : f32
    %6 = vector.broadcast %cst_5 : f32 to vector<32x8xf32>
    %7 = arith.mulf %6, %5 : vector<32x8xf32>
    %8 = arith.maximumf %5, %7 : vector<32x8xf32>
    %c0_6 = arith.constant 0 : index
    %c0_7 = arith.constant 0 : index
    %9 = vector.load %arg4[%c0_6, %c0_7] : memref<32x32xf32, #tpu.memory_space<vmem>>, vector<32x32xf32>
    %cst_8 = arith.constant dense<0.000000e+00> : vector<32x8xf32>
    %10 = tpu.matmul %9, %8, %cst_8 {dimension_numbers = #tpu.dot_dimension_numbers<[1], [0], [0], [1], [0, 0, 1, 1], [], []>} : vector<32x32xf32>, vector<32x8xf32>, vector<32x8xf32> -> vector<32x8xf32>
    %c0_9 = arith.constant 0 : index
    %c0_10 = arith.constant 0 : index
    %11 = vector.load %arg5[%c0_9, %c0_10] : memref<32x1xf32, #tpu.memory_space<vmem>>, vector<32x1xf32>
    %12 = vector.broadcast %11 : vector<32x1xf32> to vector<32x8xf32>
    %13 = arith.addf %10, %12 : vector<32x8xf32>
    %cst_11 = arith.constant 2.000000e-01 : f32
    %14 = vector.broadcast %cst_11 : f32 to vector<32x8xf32>
    %15 = arith.mulf %14, %13 : vector<32x8xf32>
    %16 = arith.maximumf %13, %15 : vector<32x8xf32>
    %c0_12 = arith.constant 0 : index
    %c0_13 = arith.constant 0 : index
    %17 = vector.load %arg6[%c0_12, %c0_13] : memref<8x32xf32, #tpu.memory_space<vmem>>, vector<8x32xf32>
    %cst_14 = arith.constant dense<0.000000e+00> : vector<8x8xf32>
    %18 = tpu.matmul %17, %16, %cst_14 {dimension_numbers = #tpu.dot_dimension_numbers<[1], [0], [0], [1], [0, 0, 1, 1], [], []>} : vector<8x32xf32>, vector<32x8xf32>, vector<8x8xf32> -> vector<8x8xf32>
    %19 = vector.extract_strided_slice %18 {offsets = [0, 0], sizes = [1, 8], strides = [1, 1]} : vector<8x8xf32> to vector<1x8xf32>
    %c0_15 = arith.constant 0 : index
    %c0_16 = arith.constant 0 : index
    %20 = vector.load %arg7[%c0_15, %c0_16] : memref<1x1xf32, #tpu.memory_space<vmem>>, vector<1x1xf32>
    %21 = vector.broadcast %20 : vector<1x1xf32> to vector<1x8xf32>
    %22 = arith.addf %19, %21 : vector<1x8xf32>
    %c0_17 = arith.constant 0 : index
    %c0_18 = arith.constant 0 : index
    %23 = vector.load %arg8[%c0_17, %c0_18] : memref<1x8xf32, #tpu.memory_space<vmem>>, vector<1x8xf32>
    tpu.vector_store %arg8[%c0_17, %c0_18], %22 {strides = array<i32>} : memref<1x8xf32, #tpu.memory_space<vmem>>, vector<1x8xf32>,
    return
  }
  func.func @transform_0(%arg0: i32) -> (i32, i32) {
    %c0_i32 = arith.constant 0 : i32
    %c0_i32_0 = arith.constant 0 : i32
    return %arg0, %c0_i32 : i32, i32
  }
  func.func @transform_1(%arg0: i32) -> (i32, i32) {
    %c0_i32 = arith.constant 0 : i32
    %c0_i32_0 = arith.constant 0 : i32
    %c0_i32_1 = arith.constant 0 : i32
    return %c0_i32, %c0_i32_0 : i32, i32
  }
  func.func @transform_2(%arg0: i32) -> (i32, i32) {
    %c0_i32 = arith.constant 0 : i32
    %c0_i32_0 = arith.constant 0 : i32
    %c0_i32_1 = arith.constant 0 : i32
    return %c0_i32, %c0_i32_0 : i32, i32
  }
  func.func @transform_3(%arg0: i32) -> (i32, i32) {
    %c0_i32 = arith.constant 0 : i32
    %c0_i32_0 = arith.constant 0 : i32
    %c0_i32_1 = arith.constant 0 : i32
    return %c0_i32, %c0_i32_0 : i32, i32
  }
  func.func @transform_4(%arg0: i32) -> (i32, i32) {
    %c0_i32 = arith.constant 0 : i32
    %c0_i32_0 = arith.constant 0 : i32
    %c0_i32_1 = arith.constant 0 : i32
    return %c0_i32, %c0_i32_0 : i32, i32
  }
  func.func @transform_5(%arg0: i32) -> (i32, i32) {
    %c0_i32 = arith.constant 0 : i32
    %c0_i32_0 = arith.constant 0 : i32
    %c0_i32_1 = arith.constant 0 : i32
    return %c0_i32, %c0_i32_0 : i32, i32
  }
  func.func @transform_6(%arg0: i32) -> (i32, i32) {
    %c0_i32 = arith.constant 0 : i32
    %c0_i32_0 = arith.constant 0 : i32
    %c0_i32_1 = arith.constant 0 : i32
    return %c0_i32, %c0_i32_0 : i32, i32
  }
  func.func @transform_7(%arg0: i32) -> (i32, i32) {
    %c0_i32 = arith.constant 0 : i32
    %c0_i32_0 = arith.constant 0 : i32
    return %c0_i32, %arg0 : i32, i32
  }
}

</mosaic_0001>

<bundles_post_ra>
// kernel: tpu_custom_call.1
= control target key start
LH: loop header
LB: loop body
LE: loop exit
PB: predicated region body
PF: predicated region fallthrough
CT: control target
= control target key end

     0   :  { %s680_s0 = inlined_call_operand.hbm [shape: f32[8,32], index: 0, kind: input, shape index: {}]   ;;  %s681_s1 = inlined_call_operand.vmem [shape: f32[32,32], index: 1, kind: input, shape index: {}]   ;;  %s682_s2 = inlined_call_operand.vmem [shape: f32[32,1], index: 2, kind: input, shape index: {}]   ;;  %s683_s3 = inlined_call_operand.vmem [shape: f32[32,32], index: 3, kind: input, shape index: {}]   ;;  %s684_s4 = inlined_call_operand.vmem [shape: f32[32,1], index: 4, kind: input, shape index: {}]   ;;  %s685_s5 = inlined_call_operand.vmem [shape: f32[8,32], index: 5, kind: input, shape index: {}]   ;;  %s686_s6 = inlined_call_operand.<no memory space> [shape: f32[1,1], index: 6, kind: input, shape index: {}]   ;;  %s687_s7 = inlined_call_operand.hbm [shape: f32[1,8], index: 7, kind: output, shape index: {}]  }
   0x1   :  { %v12_v0 = vstv %s686_s6 }
   0x2   :  { %13 = vst [vmem:[#allocation2] sm:$0x1] %v12_v0 }
   0x3   :  { %14 = vsyncpa [#allocation4], 0 }
   0x4   :  { %15 = vsyncpa [#allocation5], 0  ;;  %s545_s26 = smov [#allocation3]   ;;  %s497_s30 = scalar_lea.hbm %s680_s0, 128 }
   0x5   :  { %s22_s27 = sshll.u32 %s545_s26, 4  ;;  %p498_p0 = scmp.ne.s32.totalorder %s680_s0, %s497_s30  ;;  %s23_s27 = int_to_ptr.vmem [resolvable:$true] %s22_s27 }
   0x6   :  { %p501_p1 = scmp.lt.u32.totalorder %s497_s30, %s680_s0 }
   0x8   :  { %p503_p2 = pnand %p501_p1, %p498_p0 }
   0xa   :  { %506 = shalt.err (!%p503_p2)
}
   0xb   :  { %s507_s6 = scalar_lea.vmem %s23_s27, 128  ;;  %p512_p4 = scmp.lt.s32.totalorder %s23_s27, %s23_s27 }
   0xc   :  { %p508_p3 = scmp.ne.s32.totalorder %s23_s27, %s507_s6  ;;  %p513_p5 = scmp.lt.s32.totalorder %s507_s6, %s507_s6 }
   0xe   :  { %p514_p6 = por %p513_p5, %p512_p4 }
  0x10   :  { %p515_p7 = pnand %p514_p6, %p508_p3 }
  0x12   :  { %518 = shalt.err (!%p515_p7)
}
  0x13   :  { %25 = dma.hbm_to_vmem [thread:$0]  %s680_s0, 128, %s23_s27, [#allocation4]  }
  0x14   :  { %541 = dma.done.wait [#allocation4], 128  }
  0x15   :  { %542 = vsyncadd [#allocation4], 4294967168  ;;  %v546_v1 = vmov 0   ;;  %vm70_vm0 = vcmask 261120   ;;  %v41_v2 = vld [vmem:[#allocation3] sm:$0xff]  ;;  %v48_v6 = vld [vmem:[%s682_s2 + $0x10] sm:$0xff] }
  0x16   :  { %495 = vset.pattern.permute.xlu0 %v546_v1  ;;  %496 = vset.pattern.permute.xlu1 %v546_v1  ;;  %v42_v3 = vld [vmem:[%s681_s1] sm:$0xff]  ;;  %v43_v5 = vld [vmem:[%s681_s1 + $0x8] sm:$0xff]  ;;  %v44_v7 = vld [vmem:[%s681_s1 + $0x10] sm:$0xff]  ;;  %v547_v42 = vmov 0.0|0.0   ;;  %vm548_vm1 = vmmov 0   ;;  %v549_v43 = vmov 0.0  }
  0x17   :  { %442 = vmatprep.subr.msk.mxu0 %vm70_vm0, %v41_v2  ;;  %444 = vmatprep.mubr.msk.f32.mxu0 %vm70_vm0, %v42_v3  ;;  %v46_v4 = vld [vmem:[%s682_s2] sm:$0xff]  ;;  %v47_v8 = vld [vmem:[%s682_s2 + $0x8] sm:$0xff]  ;;  %v49_v9 = vld [vmem:[%s682_s2 + $0x18] sm:$0xff]  ;;  %v392_v3 = vlaneseq  ;;  %s550_s18 = smov [#allocation6]   ;;  %vm397_vm2 = vcmask 57344  }
  0x18   :  { %443 = vmatpush3.xpose.msk.msra.mxu0 %vm70_vm0, %v41_v2  ;;  %52 = vperm.xlu0 %495, %v46_v4   ;;  %v45_v10 = vld [vmem:[%s681_s1 + $0x18] sm:$0xff]  ;;  %v183_v11 = vld [vmem:[%s684_s4] sm:$0xff]  ;;  %v184_v12 = vld [vmem:[%s684_s4 + $0x8] sm:$0xff]  ;;  %s405_s19 = sshll.u32 %s550_s18, 4  ;;  %s406_s19 = int_to_ptr.vmem [resolvable:$true] %s405_s19 }
  0x19   :  { %62 = vperm.xlu1 %496, %v48_v6   ;;  %v185_v13 = vld [vmem:[%s684_s4 + $0x10] sm:$0xff]  ;;  %v186_v14 = vld [vmem:[%s684_s4 + $0x18] sm:$0xff]  ;;  %v386_v15 = vld [vmem:[#allocation2] sm:$0x1]  ;;  %483 = vmatprep.subr.bf16.mxu0 %v547_v42  ;;  %v393_v4 = vshrl.u32 %v392_v3, 7  ;;  %s519_s20 = scalar_lea.vmem %s406_s19, 16  ;;  %p524_p9 = scmp.lt.s32.totalorder %s406_s19, %s406_s19 }
  0x1a   :  { %v179_v16 = vld [vmem:[%s683_s3] sm:$0xff]  ;;  %v180_v39 = vld [vmem:[%s683_s3 + $0x8] sm:$0xff]  ;;  %v181_v40 = vld [vmem:[%s683_s3 + $0x10] sm:$0xff]  ;;  %p520_p8 = scmp.ne.s32.totalorder %s406_s19, %s519_s20  ;;  %s523_s21 = scalar_lea.vmem %s406_s19, 32 }
  0x1b   :  { %445 = vmatmul.mubr.msk.f32.vlgmr.msra.gmra.mrb[0].mxu0 %vm70_vm0, %v43_v5  ;;  %458 = vmatprep.mubr.msk.f32.mxu1 %vm70_vm0, %v179_v16  ;;  %v182_v41 = vld [vmem:[%s683_s3 + $0x18] sm:$0xff]  ;;  %v312_v2 = vld [vmem:[%s685_s5] sm:$0xff]  ;;  %v394_v5 = vsub.s32 0, %v393_v4  ;;  %p525_p10 = scmp.lt.s32.totalorder %s523_s21, %s519_s20 }
  0x1c   :  { %447 = vmatprep.mubr.msk.f32.mxu0 %vm70_vm0, %v44_v7  ;;  %57 = vperm.xlu0 %495, %v47_v8  }
  0x1d   :  { %67 = vperm.xlu1 %496, %v49_v9   ;;  %p526_p11 = por %p525_p10, %p524_p9 }
  0x1f   :  { %448 = vmatmul.mubr.msk.f32.gmra.mrb[2].mxu0 %vm70_vm0, %v45_v10  ;;  %p527_p12 = pnand %p526_p11, %p520_p8 }
  0x20   :  { %189 = vperm.xlu0 %495, %v183_v11   ;;  %472 = vmatprep.mubr.msk.f32.mxu0 %vm548_vm1, %v549_v43 }
  0x21   :  { %194 = vperm.xlu1 %496, %v184_v12  }
  0x24   :  { %199 = vperm.xlu0 %495, %v185_v13  }
  0x25   :  { %204 = vperm.xlu1 %496, %v186_v14  }
  0x28   :  { %389 = vperm.xlu0 %495, %v386_v15  }
  0x97   :  { %v53_v17 = vpop.permute.xlu0 %52 }
  0x98   :  { %v63_v18 = vpop.permute.xlu1 %62 }
  0x9b   :  { %v58_v19 = vpop.permute.xlu0 %57 }
  0x9c   :  { %v68_v25 = vpop.permute.xlu1 %67 }
  0x9f   :  { %v190_v45 = vpop.permute.xlu0 %189 }
  0xa0   :  { %v195_v44 = vpop.permute.xlu1 %194 }
  0xa3   :  { %v200_v54 = vpop.permute.xlu0 %199 }
  0xa4   :  { %v205_v51 = vpop.permute.xlu1 %204 }
  0xa7   :  { %v390_v6 = vpop.permute.xlu0 %389 }
  0xa8   :  { %v395_v7 = vrot.slane %v390_v6, %v394_v5 }
  0xee   :  { %v446_v20 = vpop.f32.mrb[0].mxu0 }
  0xef   :  { %v158_v21 = vadd.f32 %v446_v20, %v58_v19  ;;  %v152_v22 = vpop.f32.mrb[1].mxu0 }
  0xf0   :  { %v153_v23 = vadd.f32 %v152_v22, %v53_v17 }
  0xf1   :  { %v172_v24 = vmul.f32 0.2, %v158_v21 }
  0xf2   :  { %v171_v26 = vmul.f32 0.2, %v153_v23  ;;  %v449_v27 = vpop.f32.mrb[2].mxu0 }
  0xf3   :  { %v176_v28 = vmax.f32 %v158_v21, %v172_v24  ;;  %v168_v29 = vadd.f32 %v449_v27, %v68_v25  ;;  %v162_v30 = vpop.f32.mrb[3].mxu0 }
  0xf4   :  { %v175_v31 = vmax.f32 %v153_v23, %v171_v26  ;;  %v163_v32 = vadd.f32 %v162_v30, %v63_v18 }
  0xf5   :  { %v174_v33 = vmul.f32 0.2, %v168_v29 }
  0xf6   :  { %v173_v34 = vmul.f32 0.2, %v163_v32  ;;  %v475_v35 = vpack.c.bf16 %v176_v28, %v175_v31 }
  0xf7   :  { %v178_v36 = vmax.f32 %v168_v29, %v174_v33 }
  0xf8   :  { %v177_v37 = vmax.f32 %v163_v32, %v173_v34  ;;  %476 = vmatprep.subr.bf16.mxu1 %v475_v35 }
  0xf9   :  { %478 = vmatpush3.bf16.msra.mxu1 %v475_v35 }
  0xfa   :  { %v479_v38 = vpack.c.bf16 %v178_v36, %v177_v37 }
  0xfc   :  { %480 = vmatprep.subr.bf16.mxu1 %v479_v38 }
  0xfd   :  { %482 = vmatpush3.bf16.msra.mxu1 %v479_v38 }
 0x100   :  { %459 = vmatmul.mubr.msk.f32.vlgmr.msra.gmra.mrb[0].mxu1 %vm70_vm0, %v180_v39 }
 0x101   :  { %461 = vmatprep.mubr.msk.f32.mxu1 %vm70_vm0, %v181_v40 }
 0x104   :  { %462 = vmatmul.mubr.msk.f32.gmra.mrb[2].mxu1 %vm70_vm0, %v182_v41 }
 0x1d3   :  { %v460_v46 = vpop.f32.mrb[0].mxu1 }
 0x1d4   :  { %v291_v47 = vadd.f32 %v460_v46, %v195_v44  ;;  %v285_v48 = vpop.f32.mrb[1].mxu1 }
 0x1d5   :  { %v286_v49 = vadd.f32 %v285_v48, %v190_v45 }
 0x1d6   :  { %v305_v50 = vmul.f32 0.2, %v291_v47 }
 0x1d7   :  { %v304_v52 = vmul.f32 0.2, %v286_v49  ;;  %v463_v53 = vpop.f32.mrb[2].mxu1 }
 0x1d8   :  { %v309_v55 = vmax.f32 %v291_v47, %v305_v50  ;;  %v301_v56 = vadd.f32 %v463_v53, %v205_v51  ;;  %v295_v57 = vpop.f32.mrb[3].mxu1 }
 0x1d9   :  { %v308_v58 = vmax.f32 %v286_v49, %v304_v52  ;;  %v296_v59 = vadd.f32 %v295_v57, %v200_v54 }
 0x1da   :  { %v307_v60 = vmul.f32 0.2, %v301_v56 }
 0x1db   :  { %v484_v61 = vpack.c.bf16 %v309_v55, %v308_v58  ;;  %v306_v62 = vmul.f32 0.2, %v296_v59 }
 0x1dc   :  { %v311_v63 = vmax.f32 %v301_v56, %v307_v60 }
 0x1dd   :  { %v310_v0 = vmax.f32 %v296_v59, %v306_v62  ;;  %485 = vmatpush3.bf16.msra.mxu0 %v484_v61 }
 0x1de   :  { %486 = vmatprep.subr.bf16.mxu0 %v547_v42 }
 0x1df   :  { %v487_v1 = vpack.c.bf16 %v311_v63, %v310_v0 }
 0x1e1   :  { %488 = vmatpush3.bf16.msra.mxu0 %v487_v1 }
 0x1e4   :  { %473 = vmatmul.mubr.msk.f32.vlgmr.msra.gmra.mrb[4].mxu0 %vm70_vm0, %v312_v2 }
 0x2b7   :  { %v382_v8 = vpop.f32.mrb[4].mxu0 }
 0x2b8   :  { %v396_v9 = vadd.f32 %v395_v7, %v382_v8  ;;  %v474_v10 = vpop.f32.mrb[5].mxu0 }
 0x2ba   :  { %398 = vst.msk [vmem:[#allocation6] sm:$0x1] %vm397_vm2, %v396_v9 }
 0x2bb   :  { %530 = shalt.err (!%p527_p12)
}
 0x2bc   :  { %s531_s23 = scalar_lea.hbm %s687_s7, 16 }
 0x2bd   :  { %p532_p13 = scmp.ne.s32.totalorder %s687_s7, %s531_s23  ;;  %p535_p0 = scmp.lt.u32.totalorder %s531_s23, %s687_s7 }
 0x2bf   :  { %p537_p1 = pnand %p535_p0, %p532_p13 }
 0x2c1   :  { %540 = shalt.err (!%p537_p1)
}
 0x2c2   :  { %408 = dma.vmem_to_hbm [thread:$0]  %s406_s19, 16, %s687_s7, [#allocation5]  }
 0x2c3   :  { %543 = dma.done.wait [#allocation5], 16  }
 0x2c4   :  { %544 = vsyncadd [#allocation5], 4294967280 }
 0x2c5   :  { %412 = vsyncpa [#allocation4], 1 }
 0x2c6   :  { %413 = vsyncpa [#allocation5], 1 }

</bundles_post_ra>
